<compile_context>
chip_gen: v5e
topology: v5e:2x2
jax: 0.10.0
libtpu: 0.0.40
codegen_flags: <defaults>
</compile_context>

<pallas_src>
from functools import partial

import jax
import jax.numpy as jnp
from jax import lax
from jax.experimental import pallas as pl
from jax.experimental.pallas import tpu as pltpu


def eam_kernel(x_ref, w_ref, b_ref, pem_ref, pemq_ref, o_ref, acc_ref, *, compute_dtype):
    """One (batch, query-tile) grid step.

    x_ref   : (1, C, q_tile)   input pixels for this query tile (lane = q)
    w_ref   : (IC, C)          1x1 conv weight
    b_ref   : (IC, 1)          1x1 conv bias
    pem_ref : (1, IC, HW)      full pem (keys), resident across the q axis
    pemq_ref: (1, IC, q_tile)  pem columns for this query tile
    o_ref   : (1, IC, HW)      output block (written on the last q-tile)
    acc_ref : (IC, HW) f32     output accumulator (reduction over q)
    """
    qi = pl.program_id(1)

    @pl.when(qi == 0)
    def _init():
        acc_ref[...] = jnp.zeros_like(acc_ref)

    cd = compute_dtype
    x_t = x_ref[0]                           # (C, q_tile) — lane-dense
    wk = w_ref[...]                          # (IC, C)
    bias = b_ref[...]                        # (IC, 1)
    pem = pem_ref[0]                         # (IC, HW)  — lane-dense
    pem_q = pemq_ref[0]                      # (IC, q_tile)

    # 1x1 conv for this query tile, kept transposed: projT = W @ x + b  -> (IC, q_tile).
    # Tiny matmul (K = C); keep it in f32, lane dim stays q.
    projT = jnp.dot(wk, x_t, preferred_element_type=jnp.float32) + bias

    # Scores: s[q, k] = sum_i projT[i, q] * pem[i, k]  -> (q_tile, HW), HW on lanes.
    # Contract the sublane (IC) axis of both operands; bf16 operands feed the MXU.
    s = lax.dot_general(
        projT.astype(cd), pem.astype(cd),
        dimension_numbers=(((0,), (0,)), ((), ())),
        preferred_element_type=jnp.float32)

    # Numerically stable row softmax; elementwise math stays f32 (v5e-safe).
    s = s - jnp.max(s, axis=-1, keepdims=True)
    e = jnp.exp(s)                                            # (q_tile, HW)
    l = jnp.sum(e, axis=-1, keepdims=True)                    # (q_tile, 1)
    inv_l = pl.reciprocal(l, approx=True)                     # EUP slot, ~free

    # Fold the softmax denominator into the small (IC, q_tile) pem slice instead of
    # dividing the (q_tile, HW) matrix:
    #   acc[i, k] += sum_q pem[i, q] / L[q] * e[q, k]
    pem_q_scaled = pem_q.astype(jnp.float32) * jnp.transpose(inv_l)    # (IC, q_tile)

    acc_ref[...] += jnp.dot(
        pem_q_scaled.astype(cd), e.astype(cd),
        preferred_element_type=jnp.float32)

    @pl.when(qi == pl.num_programs(1) - 1)
    def _store():
        o_ref[0] = acc_ref[...].astype(o_ref.dtype)


def _pick_q_tile(hw):
    """Query-tile rows: multiple of 128 dividing HW, sized so the (q_tile, HW) f32
    temporaries stay well inside the scoped-VMEM defaults (also fits v7x's 64 MiB)."""
    if hw % 128 != 0:
        return hw                       # tiny / irregular spatial size: single tile
    budget_rows = (16 * 1024 * 1024) // (3 * 4 * hw)          # ~3 f32 temporaries
    q = min(512, hw, max(128, (budget_rows // 128) * 128))
    while hw % q:
        q -= 128
    return q


def _vmem_limit_bytes(c, ic, hw, q_tile):
    f32 = 4
    est = (
        2 * c * q_tile * f32            # double-buffered x tile
        + 2 * ic * hw * f32             # pem (keys) block
        + 2 * ic * q_tile * f32         # double-buffered pem query tile
        + 2 * ic * hw * f32             # output block
        + ic * hw * f32                 # f32 accumulator scratch
        + 4 * q_tile * hw * f32         # score / exp / cast temporaries
    )
    # generous headroom, capped below v7x's 64 MiB physical VMEM
    return int(min(max(2 * est, 32 << 20), 56 << 20))


def eam_forward(x, pem_feats, w_conv, b_conv, *, q_tile=None,
                compute_dtype=jnp.bfloat16):
    """x: (B, C, H, W); pem_feats: (B, IC, H*W); w_conv: (IC, C, 1, 1); b_conv: (IC,)."""
    b, c, h, w = x.shape
    ic = w_conv.shape[0]
    hw = h * w

    # Glue (plain JAX, no transposes): keep HW as the trailing (lane) dimension.
    x_chw = x.reshape(b, c, hw)                 # (B, C, HW) — contiguous reshape
    wk = w_conv.reshape(ic, c)                  # (IC, C)
    bk = b_conv.reshape(ic, 1)                  # (IC, 1)

    if q_tile is None:
        q_tile = _pick_q_tile(hw)
    assert hw % q_tile == 0 and (q_tile % 128 == 0 or q_tile == hw), (hw, q_tile)
    n_q = hw // q_tile

    out = pl.pallas_call(
        partial(eam_kernel, compute_dtype=compute_dtype),
        out_shape=jax.ShapeDtypeStruct((b, ic, hw), x.dtype),
        grid_spec=pltpu.PrefetchScalarGridSpec(
            num_scalar_prefetch=0,
            grid=(b, n_q),
            in_specs=[
                pl.BlockSpec((1, c, q_tile), lambda i, j: (i, 0, j)),    # x query tile
                pl.BlockSpec((ic, c), lambda i, j: (0, 0)),              # conv weight
                pl.BlockSpec((ic, 1), lambda i, j: (0, 0)),              # conv bias
                pl.BlockSpec((1, ic, hw), lambda i, j: (i, 0, 0)),       # pem (keys)
                pl.BlockSpec((1, ic, q_tile), lambda i, j: (i, 0, j)),   # pem (queries)
            ],
            out_specs=pl.BlockSpec((1, ic, hw), lambda i, j: (i, 0, 0)),
            scratch_shapes=[pltpu.VMEM((ic, hw), jnp.float32)],
        ),
        compiler_params=pltpu.CompilerParams(
            dimension_semantics=("parallel", "arbitrary"),
            vmem_limit_bytes=_vmem_limit_bytes(c, ic, hw, q_tile),
        ),
    )(x_chw, wk, bk, pem_feats, pem_feats)

    return out.reshape(b, ic, h, w)


def eam_reference(x, pem_feats, w_conv, b_conv):
    """Pure-JAX f32 reference mirroring the PyTorch forward."""
    b, c, h, w = x.shape
    ic = w_conv.shape[0]
    hw = h * w
    proj = jnp.einsum("bchw,oc->bohw", x, w_conv.reshape(ic, c)) \
        + b_conv[None, :, None, None]                               # (B, IC, H, W)
    proj = jnp.transpose(proj.reshape(b, ic, hw), (0, 2, 1))        # (B, HW, IC)
    weights = jax.nn.softmax(
        jnp.einsum("bqi,bik->bqk", proj, pem_feats), axis=-1)       # (B, HW, HW)
    eam = jnp.einsum("bik,bkj->bij", pem_feats, weights)            # (B, IC, HW)
    return eam.reshape(b, ic, h, w)


if __name__ == "__main__":
    B, C, IC, H, W = 2, 4, 8, 16, 16
    HW = H * W

    key = jax.random.PRNGKey(0)
    kx, kpem, kw, kb = jax.random.split(key, 4)

    x = jax.random.normal(kx, (B, C, H, W), dtype=jnp.float32)
    pem_feats = jax.random.normal(kpem, (B, IC, HW), dtype=jnp.float32)

    # deterministic Conv2d(C, IC, kernel_size=1) parameters (kaiming-uniform-like scale)
    fan_in = C * 1 * 1
    bound = 1.0 / (fan_in ** 0.5)
    w_conv = jax.random.uniform(kw, (IC, C, 1, 1), jnp.float32, -bound, bound)
    b_conv = jax.random.uniform(kb, (IC,), jnp.float32, -bound, bound)

    ref = eam_reference(x, pem_feats, w_conv, b_conv)

    # f32-MXU path with q_tile=128 (2 query tiles per batch -> exercises the
    # accumulator init/writeback); tight tolerance (approx-reciprocal only).
    out_f32 = jax.block_until_ready(
        eam_forward(x, pem_feats, w_conv, b_conv, q_tile=128,
                    compute_dtype=jnp.float32))
    assert out_f32.shape == (B, IC, H, W), out_f32.shape
    assert jnp.allclose(out_f32, ref, atol=3e-3, rtol=3e-3), \
        float(jnp.max(jnp.abs(out_f32 - ref)))

    # default bf16-MXU fast path (v5e/v6e/v7x); looser tolerance from bf16 operands.
    out_bf16 = jax.block_until_ready(
        eam_forward(x, pem_feats, w_conv, b_conv, q_tile=128))
    assert out_bf16.shape == (B, IC, H, W), out_bf16.shape
    assert jnp.allclose(out_bf16, ref, atol=1e-1, rtol=1e-1), \
        float(jnp.max(jnp.abs(out_bf16 - ref)))

    print("KERNEL_OK")
</pallas_src>

<mosaic_0001>
module attributes {stable_mosaic.version = 11 : i64} {
  func.func @eam_kernel(%arg0: i32, %arg1: i32, %arg2: memref<1x4x128xf32, #tpu.memory_space<vmem>>, %arg3: memref<8x4xf32, #tpu.memory_space<vmem>>, %arg4: memref<8x1xf32, #tpu.memory_space<vmem>>, %arg5: memref<1x8x256xf32, #tpu.memory_space<vmem>>, %arg6: memref<1x8x128xf32, #tpu.memory_space<vmem>>, %arg7: memref<1x8x256xf32, #tpu.memory_space<vmem>>, %arg8: memref<8x256xf32, #tpu.memory_space<vmem>>) attributes {dimension_semantics = [#tpu.dimension_semantics<parallel>, #tpu.dimension_semantics<arbitrary>], iteration_bounds = array<i64: 2, 2>, scalar_prefetch = 0 : i64, scratch_operands = 1 : i64, tpu.core_type = #tpu.core_type<tc>, window_params = [{transform_indices = @transform_0, window_bounds = array<i64: 1, 4, 128>}, {pipeline_mode = #tpu.pipeline_mode<synchronous>, transform_indices = @transform_1, window_bounds = array<i64: 8, 4>}, {pipeline_mode = #tpu.pipeline_mode<synchronous>, transform_indices = @transform_2, window_bounds = array<i64: 8, 1>}, {transform_indices = @transform_3, window_bounds = array<i64: 1, 8, 256>}, {transform_indices = @transform_4, window_bounds = array<i64: 1, 8, 128>}, {transform_indices = @transform_5, window_bounds = array<i64: 1, 8, 256>}]} {
    %c0_i32 = arith.constant 0 : i32
    %0 = arith.cmpi eq, %arg1, %c0_i32 : i32
    %1 = arith.extui %0 : i1 to i32
    %c0_i32_0 = arith.constant 0 : i32
    %2 = arith.cmpi ne, %1, %c0_i32_0 : i32
    scf.if %2 {
      %cst_22 = arith.constant 0.000000e+00 : f32
      %33 = vector.broadcast %cst_22 : f32 to vector<8x256xf32>
      %c0_23 = arith.constant 0 : index
      %c0_24 = arith.constant 0 : index
      %34 = vector.load %arg8[%c0_23, %c0_24] : memref<8x256xf32, #tpu.memory_space<vmem>>, vector<8x256xf32>
      tpu.vector_store %arg8[%c0_23, %c0_24], %33 {strides = array<i32>} : memref<8x256xf32, #tpu.memory_space<vmem>>, vector<8x256xf32>,
    } else {
    }
    %c0 = arith.constant 0 : index
    %c0_1 = arith.constant 0 : index
    %c0_2 = arith.constant 0 : index
    %3 = vector.load %arg2[%c0, %c0_1, %c0_2] : memref<1x4x128xf32, #tpu.memory_space<vmem>>, vector<1x4x128xf32>
    %4 = vector.shape_cast %3 : vector<1x4x128xf32> to vector<4x128xf32>
    %c0_3 = arith.constant 0 : index
    %c0_4 = arith.constant 0 : index
    %5 = vector.load %arg3[%c0_3, %c0_4] : memref<8x4xf32, #tpu.memory_space<vmem>>, vector<8x4xf32>
    %c0_5 = arith.constant 0 : index
    %c0_6 = arith.constant 0 : index
    %6 = vector.load %arg4[%c0_5, %c0_6] : memref<8x1xf32, #tpu.memory_space<vmem>>, vector<8x1xf32>
    %c0_7 = arith.constant 0 : index
    %c0_8 = arith.constant 0 : index
    %c0_9 = arith.constant 0 : index
    %7 = vector.load %arg5[%c0_7, %c0_8, %c0_9] : memref<1x8x256xf32, #tpu.memory_space<vmem>>, vector<1x8x256xf32>
    %8 = vector.shape_cast %7 : vector<1x8x256xf32> to vector<8x256xf32>
    %c0_10 = arith.constant 0 : index
    %c0_11 = arith.constant 0 : index
    %c0_12 = arith.constant 0 : index
    %9 = vector.load %arg6[%c0_10, %c0_11, %c0_12] : memref<1x8x128xf32, #tpu.memory_space<vmem>>, vector<1x8x128xf32>
    %10 = vector.shape_cast %9 : vector<1x8x128xf32> to vector<8x128xf32>
    %cst = arith.constant dense<0.000000e+00> : vector<8x128xf32>
    %11 = tpu.matmul %5, %4, %cst {dimension_numbers = #tpu.dot_dimension_numbers<[1], [0], [0], [1], [0, 0, 1, 1], [], []>} : vector<8x4xf32>, vector<4x128xf32>, vector<8x128xf32> -> vector<8x128xf32>
    %12 = vector.broadcast %6 : vector<8x1xf32> to vector<8x128xf32>
    %13 = arith.addf %11, %12 : vector<8x128xf32>
    %cst_13 = arith.constant dense<0.000000e+00> : vector<128x256xf32>
    %14 = tpu.matmul %13, %8, %cst_13 {dimension_numbers = #tpu.dot_dimension_numbers<[0], [0], [1], [1], [0, 1, 1, 1], [], []>} : vector<8x128xf32>, vector<8x256xf32>, vector<128x256xf32> -> vector<128x256xf32>
    %cst_14 = arith.constant dense<0xFF800000> : vector<128xf32>
    %15 = vector.multi_reduction <maximumf>, %14, %cst_14 [1] : vector<128x256xf32> to vector<128xf32>
    %16 = vector.shape_cast %15 : vector<128xf32> to vector<128x1xf32>
    %17 = vector.broadcast %16 : vector<128x1xf32> to vector<128x256xf32>
    %18 = arith.subf %14, %17 : vector<128x256xf32>
    %19 = math.exp %18 : vector<128x256xf32>
    %cst_15 = arith.constant dense<0.000000e+00> : vector<128xf32>
    %20 = vector.multi_reduction <add>, %19, %cst_15 [1] : vector<128x256xf32> to vector<128xf32>
    %21 = vector.shape_cast %20 : vector<128xf32> to vector<128x1xf32>
    %22 = tpu.reciprocal %21 {approx = true} : vector<128x1xf32> -> vector<128x1xf32>
    %23 = tpu.transpose %22, [1, 0] : vector<128x1xf32> -> vector<1x128xf32>
    %24 = vector.broadcast %23 : vector<1x128xf32> to vector<8x128xf32>
    %25 = arith.mulf %10, %24 : vector<8x128xf32>
    %c0_16 = arith.constant 0 : index
    %c0_17 = arith.constant 0 : index
    %26 = vector.load %arg8[%c0_16, %c0_17] : memref<8x256xf32, #tpu.memory_space<vmem>>, vector<8x256xf32>
    %cst_18 = arith.constant dense<0.000000e+00> : vector<8x256xf32>
    %27 = tpu.matmul %25, %19, %cst_18 {dimension_numbers = #tpu.dot_dimension_numbers<[1], [0], [0], [1], [0, 0, 1, 1], [], []>} : vector<8x128xf32>, vector<128x256xf32>, vector<8x256xf32> -> vector<8x256xf32>
    %28 = arith.addf %26, %27 : vector<8x256xf32>
    %c0_19 = arith.constant 0 : index
    %c0_20 = arith.constant 0 : index
    %29 = vector.load %arg8[%c0_19, %c0_20] : memref<8x256xf32, #tpu.memory_space<vmem>>, vector<8x256xf32>
    tpu.vector_store %arg8[%c0_19, %c0_20], %28 {strides = array<i32>} : memref<8x256xf32, #tpu.memory_space<vmem>>, vector<8x256xf32>,
    %c1_i32 = arith.constant 1 : i32
    %30 = arith.cmpi eq, %arg1, %c1_i32 : i32
    %31 = arith.extui %30 : i1 to i32
    %c0_i32_21 = arith.constant 0 : i32
    %32 = arith.cmpi ne, %31, %c0_i32_21 : i32
    scf.if %32 {
      %c0_22 = arith.constant 0 : index
      %c0_23 = arith.constant 0 : index
      %33 = vector.load %arg8[%c0_22, %c0_23] : memref<8x256xf32, #tpu.memory_space<vmem>>, vector<8x256xf32>
      %c0_24 = arith.constant 0 : index
      %c0_25 = arith.constant 0 : index
      %c0_26 = arith.constant 0 : index
      %34 = vector.load %arg7[%c0_24, %c0_25, %c0_26] : memref<1x8x256xf32, #tpu.memory_space<vmem>>, vector<1x8x256xf32>
      %35 = vector.shape_cast %34 : vector<1x8x256xf32> to vector<8x256xf32>
      %36 = vector.shape_cast %33 : vector<8x256xf32> to vector<1x8x256xf32>
      tpu.vector_store %arg7[%c0_24, %c0_25, %c0_26], %36 {strides = array<i32>} : memref<1x8x256xf32, #tpu.memory_space<vmem>>, vector<1x8x256xf32>,
    } else {
    }
    return
  }
  func.func @transform_0(%arg0: i32, %arg1: i32) -> (i32, i32, i32) {
    %c0_i32 = arith.constant 0 : i32
    %c0_i32_0 = arith.constant 0 : i32
    return %arg0, %c0_i32, %arg1 : i32, i32, i32
  }
  func.func @transform_1(%arg0: i32, %arg1: i32) -> (i32, i32) {
    %c0_i32 = arith.constant 0 : i32
    %c0_i32_0 = arith.constant 0 : i32
    %c0_i32_1 = arith.constant 0 : i32
    return %c0_i32, %c0_i32_0 : i32, i32
  }
  func.func @transform_2(%arg0: i32, %arg1: i32) -> (i32, i32) {
    %c0_i32 = arith.constant 0 : i32
    %c0_i32_0 = arith.constant 0 : i32
    %c0_i32_1 = arith.constant 0 : i32
    return %c0_i32, %c0_i32_0 : i32, i32
  }
  func.func @transform_3(%arg0: i32, %arg1: i32) -> (i32, i32, i32) {
    %c0_i32 = arith.constant 0 : i32
    %c0_i32_0 = arith.constant 0 : i32
    %c0_i32_1 = arith.constant 0 : i32
    return %arg0, %c0_i32, %c0_i32_0 : i32, i32, i32
  }
  func.func @transform_4(%arg0: i32, %arg1: i32) -> (i32, i32, i32) {
    %c0_i32 = arith.constant 0 : i32
    %c0_i32_0 = arith.constant 0 : i32
    return %arg0, %c0_i32, %arg1 : i32, i32, i32
  }
  func.func @transform_5(%arg0: i32, %arg1: i32) -> (i32, i32, i32) {
    %c0_i32 = arith.constant 0 : i32
    %c0_i32_0 = arith.constant 0 : i32
    %c0_i32_1 = arith.constant 0 : i32
    return %arg0, %c0_i32, %c0_i32_0 : i32, i32, i32
  }
}

</mosaic_0001>

<bundles_post_ra>
// kernel: tpu_custom_call.1
= control target key start
LH: loop header
LB: loop body
LE: loop exit
PB: predicated region body
PF: predicated region fallthrough
CT: control target
= control target key end

     0   :  { %s1996_s0 = inlined_call_operand.vmem [shape: f32[2,4,256], index: 0, kind: input, shape index: {}]   ;;  %s1997_s1 = inlined_call_operand.vmem [shape: f32[8,4], index: 1, kind: input, shape index: {}]   ;;  %s1998_s2 = inlined_call_operand.vmem [shape: f32[8,1], index: 2, kind: input, shape index: {}]   ;;  %s1999_s3 = inlined_call_operand.hbm [shape: f32[2,8,256], index: 3, kind: input, shape index: {}]   ;;  %s2000_s4 = inlined_call_operand.hbm [shape: f32[2,8,256], index: 4, kind: input, shape index: {}]   ;;  %s2001_s5 = inlined_call_operand.hbm [shape: f32[2,8,256], index: 5, kind: output, shape index: {}]  }
   0x1   :  { %2010 = sst [smem:[#allocation18_spill]] %s1996_s0 }
   0x2   :  { %2011 = sst [smem:[#allocation19_spill]] %s1997_s1 }
   0x3   :  { %2012 = sst [smem:[#allocation20_spill]] %s1998_s2 }
   0x4   :  { %2013 = sst [smem:[#allocation21_spill]] %s1999_s3 }
   0x5   :  { %2014 = sst [smem:[#allocation22_spill]] %s2001_s5 }
   0x6   :  { %10 = vsyncpa [#allocation4], 0 }
   0x7   :  { %12 = vsyncpa [#allocation4 + $0x1], 0 }
   0x8   :  { %13 = vsyncpa [#allocation7], 0 }
   0x9   :  { %15 = vsyncpa [#allocation7 + $0x1], 0 }
   0xa   :  { %16 = vsyncpa [#allocation5], 0 }
   0xb   :  { %18 = vsyncpa [#allocation5 + $0x1], 0  ;;  %s1510_s18 = smov 0   ;;  %s1512_s19 = smov 0  }
   0xc   :  { %s1514_s20 = smov 0   ;;  %s1516_s21 = smov 0  }
   0xd   :  { %s1518_s22 = smov 0   ;;  %s1520_s23 = smov 0  }
   0xe   :  { %s1522_s24 = smov 0   ;;  %s1524_s25 = smov 0  }
   0xf   :  { %s1526_s26 = smov 0   ;;  %s1528_s27 = smov 0  }
  0x10   :  { %s1530_s28 = smov 0  }
  0x11 LB: > { %2015 = sst [smem:[#allocation12_spill]] %s1448_s21  ;;  %s1022_s29 = sadd.s32 4294967295, %s1476_s28   ;;  %s1476_s28 = sphi %s1530_s28, %s24_s28   ;;  %s1472_s27 = sphi %s1528_s27, %s2053_s27   ;;  %s1468_s26 = sphi %s1526_s26, %s2052_s26   ;;  %s1464_s25 = sphi %s1524_s25, %s2051_s25   ;;  %s1460_s24 = sphi %s1522_s24, %s2050_s24   ;;  %s1456_s23 = sphi %s1520_s23, %s2049_s23   ;;  %s1452_s22 = sphi %s1518_s22, %s2048_s22   ;;  %s1448_s21 = sphi %s1516_s21, %s2047_s21   ;;  %s1444_s20 = sphi %s1514_s20, %s2046_s20   ;;  %s1440_s19 = sphi %s1512_s19, %s2045_s19   ;;  %s1436_s18 = sphi %s1510_s18, %s2044_s18  }
  0x12   : > { %2016 = sst [smem:[#allocation13_spill]] %s1460_s24  ;;  %s1023_s30 = sadd.s32 4294967294, %s1476_s28  }
  0x13   : > { %2017 = sst [smem:[#allocation14_spill]] %s1464_s25  ;;  %p120_p0 = scmp.ne.s32.totalorder %s1456_s23, %s1452_s22 }
  0x14   : > { %p121_p1 = scmp.eq.s32.totalorder %s1476_s28, 0  ;;  %p126_p2 = scmp.ne.s32.totalorder %s1452_s22, %s1448_s21 }
  0x15   : > { %p1573_p3 = scmp.eq.s32.totalorder %s1022_s29, 0  ;;  %p178_p4 = scmp.eq.s32.totalorder %s1022_s29, 3 }
  0x16   : > { %p1579_p5 = por %p121_p1, %p120_p0  ;;  %p184_p6 = scmp.eq.s32.totalorder %s1023_s30, 3 }
  0x17   : > { %p1585_p7 = por %p1573_p3, %p126_p2  ;;  %p1589_p8 = por %p178_p4, %p120_p0 }
  0x18   : > { %p1593_p9 = por %p184_p6, %p126_p2  ;;  %p1100_p10 = scmp.lt.s32.totalorder %s1476_s28, 4 }
  0x19   : > { %s2021_s10 = scalar_select %p1589_p8, 1, 0 }
  0x1a   : > { %s2023_s11 = scalar_select %p1593_p9, 1, 0 }
  0x1b   : > { %2022 = sst [smem:[#allocation15_spill]] %s2021_s10  ;;  %s221_s12 = sand.u32 1, %s1456_s23  }
  0x1c   : > { %2024 = sst [smem:[#allocation16_spill]] %s2023_s11  ;;  %s1026_s13 = sshll.u32 %s221_s12, 4 }
  0x1d   : > { %s1079_s14 = sshll.u32 %s1472_s27, 4  ;;  %s2025_s3 = sld [smem:[#allocation21_spill]] }
  0x1e   : > { %s225_s29 = scalar_lea.vmem [#allocation3], %s1026_s13  ;;  %p1090_p11 = pnand %p1100_p10, %p1579_p5 }
  0x1f   : > { %s234_s30 = sshll.u32 %s225_s29, 4  ;;  %p1032_p12 = scmp.ge.s32.totalorder %s1476_s28, 1  ;;  %s235_s30 = int_to_ptr.vmem [resolvable:$true] %s234_s30 }
  0x20   : > { %p260_p13 = scmp.lt.s32.totalorder %s1476_s28, 5  ;;  %s33_s15 = sadd.s32 1, %s1468_s26 }
  0x21   : > { %s36_s16 = sadd.s32 1, %s1472_s27  ;;  %p34_p2 = scmp.ge.s32.totalorder %s33_s15, 2 }
  0x22   : > { %p1609_p0 = pnand %p1032_p12, %p260_p13  ;;  %p148_p4 = scmp.ne.s32.totalorder %s1444_s20, %s1440_s19 }
  0x23   : > { %s230_s17 = scalar_lea.hbm %s2025_s3, %s1079_s14  ;;  %s222_s14 = scalar_lea.sflag [#allocation4], %s221_s12 }
  0x24   : > { %s232_s6 = sshll.u32 %s230_s17, 4  ;;  %s141_s17 = sadd.s32 1, %s1444_s20  ;;  %s233_s6 = int_to_ptr.hbm [resolvable:$true] %s232_s6 }
  0x25   : > { %1092 = dma.hbm_to_vmem [thread:$0]  (!%p1090_p11), %s233_s6, 256, %s235_s30, %s222_s14  }
  0x26   : > { %p154_p6 = scmp.ne.s32.totalorder %s1440_s19, %s1436_s18  ;;  %s2055_s15 = smov (%p34_p2, %s33_s15), 0 }
  0x27   : > { %2027 = sst [smem:[#allocation17_spill]] %s2055_s15  ;;  %s2057_s16 = smov (!%p34_p2, %s36_s16), %s1472_s27 }
  0x28   : > { %s137_s6 = ssub.s32 %s1468_s26, %s2055_s15  ;;  %p1627_p5 = por %p148_p4, %p121_p1 }
  0x29   : > { %p38_p11 = scmp.ge.s32.totalorder %s2057_s16, 2  ;;  %p1633_p12 = por %p154_p6, %p1573_p3 }
  0x2a   : > { %s241_s18 = sand.u32 1, %s1444_s20   ;;  %s1030_s29 = sshll.u32 %s1472_s27, 1 }
  0x2b   : > { %s2059_s16 = smov (%p38_p11, %s2057_s16), 0  ;;  %s1029_s30 = sshll.u32 %s241_s18, 3 }
  0x2c   : > { %s110_s14 = ssub.s32 %s1472_s27, %s2059_s16  ;;  %s249_s15 = sadd.s32 %s1468_s26, %s1030_s29 }
  0x2d   : > { %p111_p13 = scmp.eq.s32.totalorder %s110_s14, 0  ;;  %s138_s3 = sor.u32 %s137_s6, %s110_s14 }
  0x2e   : > { %p139_p1 = scmp.eq.s32.totalorder %s138_s3, 0  ;;  %s2030_s11 = sadd.s32 1, %s1456_s23 }
  0x2f   : > { %s1647_s21 = scalar_select %p111_p13, %s1456_s23, %s2030_s11  }
  0x30   : > { %s1650_s7 = scalar_select %p139_p1, %s1444_s20, %s141_s17  }
  0x31   : > { %s1031_s5 = sshll.u32 %s249_s15, 3  ;;  %s245_s10 = scalar_lea.vmem [#allocation6], %s1029_s30 }
  0x32   : > { %s255_s2 = sshll.u32 %s245_s10, 4  ;;  %s251_s24 = scalar_lea.hbm %s2000_s4, %s1031_s5  ;;  %s256_s2 = int_to_ptr.vmem [resolvable:$true] %s255_s2 }
  0x33   : > { %s253_s25 = sshll.u32 %s251_s24, 4  ;;  %p1093_p3 = pnand %p1100_p10, %p1627_p5  ;;  %s254_s25 = int_to_ptr.hbm [resolvable:$true] %s253_s25 }
  0x34   : > { %s242_s3 = scalar_lea.sflag [#allocation7], %s241_s18  ;;  %264 = sbr.rel (%p1609_p0) target bundleno = 1120 (0x460), region = 40 }
  0x35   : > { %1095 = dma.hbm_to_vmem [thread:$0]  (!%p1093_p3), %s254_s25, 128, %s256_s2, %s242_s3  }
  0x36   : > { %s1662_s11 = sand.u32 (!%p1609_p0), 1, %s1452_s22  }
  0x37   : > { %s1033_s10 = sshll.u32 (!%p1609_p0), %s1662_s11, 4  ;;  %s267_s0 = scalar_lea.sflag (!%p1609_p0), [#allocation4], %s1662_s11 }
  0x38   : > { %s1666_s1 = scalar_lea.vmem (!%p1609_p0), [#allocation3], %s1033_s10 }
  0x39   : > { %1423 = dma.done.wait (%p1585_p7), %s267_s0, 256  }
  0x3a   : > { %1425 = vsyncadd (%p1585_p7), %s267_s0, 4294967040  ;;  %s276_s2 = sand.u32 1, %s1440_s19  }
  0x3b   : > { %s1673_s5 = sshll.u32 %s276_s2, 3  ;;  %s277_s24 = scalar_lea.sflag [#allocation7], %s276_s2 }
  0x3c   : > { %s280_s25 = scalar_lea.vmem [#allocation6], %s1673_s5 }
  0x3d   : > { %1427 = dma.done.wait (%p1633_p12), %s277_s24, 128  }
  0x3e   : > { %1429 = vsyncadd (%p1633_p12), %s277_s24, 4294967168  ;;  %s2031_s13 = sld [smem:[#allocation14_spill]]  ;;  %s1687_s3 = scalar_lea.vmem [#allocation8], %s1033_s10 }
  0x3f   : > { %s2032_s15 = sld [smem:[#allocation13_spill]] }
  0x40   : > { %s2033_s30 = sld [smem:[#allocation18_spill]] }
  0x44   : > { %p321_p10 = scmp.lt.s32.totalorder %s2031_s13, 1 }
  0x45   : > { %p323_p0 = scmp.lt.s32.totalorder %s2032_s15, 1  ;;  %p1038_p7 = scmp.ne.s32.totalorder %s2032_s15, 0 }
  0x46   : > { %s2061_s13 = smov (!%p321_p10, %s2031_s13), 1 }
  0x47   : > { %s324_s9 = scalar_select %p323_p0, %s2032_s15, 1 }
  0x48   : > { %s1036_s17 = sshll.u32 %s2061_s13, 1  ;;  %332 = sbr.rel (%p1038_p7) target bundleno = 80 (0x50), region = 52 }
  0x49   : > { %s326_s6 = sadd.s32 %s1036_s17, %s324_s9 }
  0x4a   : > { %s1037_s8 = sshll.u32 %s326_s6, 2 }
  0x4b   : > { %s328_s14 = scalar_lea.vmem %s2033_s30, %s1037_s8 }
  0x4d   : > { %v1478_v0 = vmov 0.0  }
  0x4e   : > { %333 = vst [vmem:[#allocation2] sm:$0xff] %v1478_v0 }
  0x4f   : > { %334 = vst [vmem:[#allocation2 + $0x8] sm:$0xff] %v1478_v0 }
  0x50 PF: > { %v335_v1 = vld [vmem:[%s328_s14] sm:$0xf]  ;;  %vm350_vm0 = vcmask 1043456   ;;  %s2034_s2 = sld [smem:[#allocation19_spill]]  ;;  %vm346_vm1 = vcmask 31744   ;;  %v1479_v3 = vmov 0  }
  0x51   : > { %1039 = vmatpush.msk.msra.mxu0 %vm350_vm0, %v335_v1  ;;  %1193 = vset.pattern.permute.xlu0 %v1479_v3  ;;  %s2035_s13 = sld [smem:[#allocation20_spill]]  ;;  %v338_v5 = vld [vmem:[%s1666_s1] sm:$0xff]  ;;  %v339_v6 = vld [vmem:[%s1666_s1 + $0x8] sm:$0xff]  ;;  %vm406_vm2 = vcmask 64512  }
  0x52   : > { %470 = vmatpush.msra.mxu1 %v338_v5  ;;  %1082 = vmatpush.msra.mxu2 %v339_v6  ;;  %s2036_s1 = sld [smem:[#allocation13_spill]] }
  0x53   : > { %535 = vmatpush.msrb.mxu0 %v339_v6  ;;  %1081 = vmatpush.msra.mxu3 %v338_v5 }
  0x56   : > { %v336_v2 = vld [vmem:[%s2034_s2] sm:$0xff] }
  0x57   : > { %v337_v4 = vld [vmem:[%s2035_s13] sm:$0xff]  ;;  %1040 = vmatmul.msk.f32.vlgmr.msra.gmra.mxu0 %vm346_vm1, %v336_v2 }
  0x58   : > { %343 = vperm.xlu0 %1193, %v337_v4   ;;  %p1073_p2 = scmp.ne.s32.totalorder %s2036_s1, 1 }
  0xca   : > { %v344_v7 = vpop.permute.xlu0 %343 }
  0xd4   : > { %v371_v8 = vpop.f32.mrf.mxu0 }
  0xd5   : > { %v372_v9 = vadd.f32 %v371_v8, %v344_v7 }
  0xd7   : > { %374 = vxpose.xlu0.b32.start.end [1/1] (short) %v372_v9, 128 }
 0x17b   : > { %v390_v10 = vpop.trf.xlu0 }
 0x17c   : > { %1041 = vmatmul.msk.f32.vlgmr.msra.gmra.mxu1 %vm406_vm2, %v390_v10  ;;  %1057 = vmatmul.msk.f32.vlgmr.msrb.gmra.mxu0 %vm406_vm2, %v390_v10 }
 0x183   : > { %v391_v11 = vpop.trf.xlu0 }
 0x184   : > { %1042 = vmatmul.msk.f32.gmra.mxu1 %vm406_vm2, %v391_v11  ;;  %1058 = vmatmul.msk.f32.gmra.mxu0 %vm406_vm2, %v391_v11 }
 0x18b   : > { %v392_v12 = vpop.trf.xlu0 }
 0x18c   : > { %1043 = vmatmul.msk.f32.gmra.mxu1 %vm406_vm2, %v392_v12  ;;  %1059 = vmatmul.msk.f32.gmra.mxu0 %vm406_vm2, %v392_v12 }
 0x193   : > { %v393_v13 = vpop.trf.xlu0 }
 0x194   : > { %1044 = vmatmul.msk.f32.gmra.mxu1 %vm406_vm2, %v393_v13  ;;  %1060 = vmatmul.msk.f32.gmra.mxu0 %vm406_vm2, %v393_v13 }
 0x19b   : > { %v394_v14 = vpop.trf.xlu0 }
 0x19c   : > { %1045 = vmatmul.msk.f32.gmra.mxu1 %vm406_vm2, %v394_v14  ;;  %1061 = vmatmul.msk.f32.gmra.mxu0 %vm406_vm2, %v394_v14 }
 0x1a3   : > { %v395_v15 = vpop.trf.xlu0 }
 0x1a4   : > { %1046 = vmatmul.msk.f32.gmra.mxu1 %vm406_vm2, %v395_v15  ;;  %1062 = vmatmul.msk.f32.gmra.mxu0 %vm406_vm2, %v395_v15 }
 0x1ab   : > { %v396_v16 = vpop.trf.xlu0 }
 0x1ac   : > { %1047 = vmatmul.msk.f32.gmra.mxu1 %vm406_vm2, %v396_v16  ;;  %1063 = vmatmul.msk.f32.gmra.mxu0 %vm406_vm2, %v396_v16 }
 0x1b3   : > { %v397_v17 = vpop.trf.xlu0 }
 0x1b4   : > { %1048 = vmatmul.msk.f32.gmra.mxu1 %vm406_vm2, %v397_v17  ;;  %1064 = vmatmul.msk.f32.vlgmr.msra.gmra.mxu2 %vm406_vm2, %v397_v17 }
 0x1bb   : > { %v398_v18 = vpop.trf.xlu0 }
 0x1bc   : > { %1049 = vmatmul.msk.f32.gmra.mxu1 %vm406_vm2, %v398_v18  ;;  %1065 = vmatmul.msk.f32.gmra.mxu2 %vm406_vm2, %v398_v18 }
 0x1c3   : > { %v399_v19 = vpop.trf.xlu0 }
 0x1c4   : > { %1050 = vmatmul.msk.f32.gmra.mxu1 %vm406_vm2, %v399_v19  ;;  %1066 = vmatmul.msk.f32.gmra.mxu2 %vm406_vm2, %v399_v19 }
 0x1cb   : > { %v400_v20 = vpop.trf.xlu0 }
 0x1cc   : > { %1051 = vmatmul.msk.f32.vlgmr.msra.gmra.mxu3 %vm406_vm2, %v400_v20  ;;  %1067 = vmatmul.msk.f32.gmra.mxu2 %vm406_vm2, %v400_v20 }
 0x1d3   : > { %v401_v21 = vpop.trf.xlu0 }
 0x1d4   : > { %1052 = vmatmul.msk.f32.gmra.mxu3 %vm406_vm2, %v401_v21  ;;  %1068 = vmatmul.msk.f32.gmra.mxu2 %vm406_vm2, %v401_v21 }
 0x1db   : > { %v402_v22 = vpop.trf.xlu0 }
 0x1dc   : > { %1053 = vmatmul.msk.f32.gmra.mxu3 %vm406_vm2, %v402_v22  ;;  %1069 = vmatmul.msk.f32.gmra.mxu2 %vm406_vm2, %v402_v22 }
 0x1e3   : > { %v403_v23 = vpop.trf.xlu0 }
 0x1e4   : > { %1054 = vmatmul.msk.f32.gmra.mxu3 %vm406_vm2, %v403_v23  ;;  %1070 = vmatmul.msk.f32.gmra.mxu2 %vm406_vm2, %v403_v23 }
 0x1eb   : > { %v404_v24 = vpop.trf.xlu0 }
 0x1ec   : > { %1055 = vmatmul.msk.f32.gmra.mxu3 %vm406_vm2, %v404_v24  ;;  %1071 = vmatmul.msk.f32.gmra.mxu2 %vm406_vm2, %v404_v24 }
 0x1f3   : > { %v405_v25 = vpop.trf.xlu0 }
 0x1f4   : > { %1056 = vmatmul.msk.f32.gmra.mxu3 %vm406_vm2, %v405_v25  ;;  %1072 = vmatmul.msk.f32.gmra.mxu2 %vm406_vm2, %v405_v25 }
 0x1f9   : > { %v472_v26 = vpop.f32.mrf.mxu1  ;;  %v537_v27 = vpop.f32.mrf.mxu0 }
 0x1fa   : > { %v585_v28 = vmax.f32 %v472_v26, %v537_v27 }
 0x1fc   : > { %586 = vmax.xlane.f32.xlu1 %v585_v28 }
 0x201   : > { %v1730_v29 = vpop.f32.mrf.mxu1  ;;  %v1732_v30 = vpop.f32.mrf.mxu0 }
 0x202   : > { %v588_v31 = vmax.f32 %v1730_v29, %v1732_v30 }
 0x204   : > { %589 = vmax.xlane.f32.xlu1 %v588_v31 }
 0x209   : > { %v1736_v32 = vpop.f32.mrf.mxu1  ;;  %v1738_v33 = vpop.f32.mrf.mxu0 }
 0x20a   : > { %v591_v34 = vmax.f32 %v1736_v32, %v1738_v33 }
 0x20c   : > { %592 = vmax.xlane.f32.xlu2 %v591_v34 }
 0x211   : > { %v1742_v35 = vpop.f32.mrf.mxu1  ;;  %v1744_v36 = vpop.f32.mrf.mxu0 }
 0x212   : > { %v594_v37 = vmax.f32 %v1742_v35, %v1744_v36 }
 0x214   : > { %595 = vmax.xlane.f32.xlu2 %v594_v37 }
 0x219   : > { %v1748_v38 = vpop.f32.mrf.mxu1  ;;  %v1750_v39 = vpop.f32.mrf.mxu0 }
 0x21a   : > { %v597_v40 = vmax.f32 %v1748_v38, %v1750_v39 }
 0x21c   : > { %598 = vmax.xlane.f32.xlu1 %v597_v40 }
 0x221   : > { %v1754_v41 = vpop.f32.mrf.mxu1  ;;  %v1756_v42 = vpop.f32.mrf.mxu0 }
 0x222   : > { %v600_v43 = vmax.f32 %v1754_v41, %v1756_v42 }
 0x224   : > { %601 = vmax.xlane.f32.xlu2 %v600_v43 }
 0x229   : > { %v1760_v44 = vpop.f32.mrf.mxu1  ;;  %v1762_v45 = vpop.f32.mrf.mxu0 }
 0x22a   : > { %v603_v46 = vmax.f32 %v1760_v44, %v1762_v45 }
 0x22c   : > { %604 = vmax.xlane.f32.xlu1 %v603_v46 }
 0x231   : > { %v1766_v47 = vpop.f32.mrf.mxu1 }
 0x237   : > { %v1768_v48 = vpop.f32.mrf.mxu2 }
 0x238   : > { %v606_v49 = vmax.f32 %v1766_v47, %v1768_v48 }
 0x239   : > { %v1772_v50 = vpop.f32.mrf.mxu1 }
 0x23a   : > { %607 = vmax.xlane.f32.xlu2 %v606_v49 }
 0x23f   : > { %v1774_v51 = vpop.f32.mrf.mxu2 }
 0x240   : > { %v609_v52 = vmax.f32 %v1772_v50, %v1774_v51 }
 0x241   : > { %v1778_v53 = vpop.f32.mrf.mxu1 }
 0x242   : > { %610 = vmax.xlane.f32.xlu1 %v609_v52 }
 0x247   : > { %v1780_v54 = vpop.f32.mrf.mxu2 }
 0x248   : > { %v612_v55 = vmax.f32 %v1778_v53, %v1780_v54 }
 0x24a   : > { %613 = vmax.xlane.f32.xlu2 %v612_v55 }
 0x24f   : > { %v1784_v56 = vpop.f32.mrf.mxu3  ;;  %v1786_v57 = vpop.f32.mrf.mxu2 }
 0x250   : > { %v615_v58 = vmax.f32 %v1784_v56, %v1786_v57 }
 0x252   : > { %616 = vmax.xlane.f32.xlu1 %v615_v58 }
 0x257   : > { %v1790_v59 = vpop.f32.mrf.mxu3  ;;  %v1792_v60 = vpop.f32.mrf.mxu2 }
 0x258   : > { %v618_v61 = vmax.f32 %v1790_v59, %v1792_v60 }
 0x25a   : > { %619 = vmax.xlane.f32.xlu2 %v618_v61 }
 0x25f   : > { %v1796_v62 = vpop.f32.mrf.mxu3  ;;  %v1798_v63 = vpop.f32.mrf.mxu2 }
 0x260   : > { %v621_v0 = vmax.f32 %v1796_v62, %v1798_v63 }
 0x262   : > { %622 = vmax.xlane.f32.xlu0 %v621_v0 }
 0x267   : > { %v1802_v1 = vpop.f32.mrf.mxu3  ;;  %v1804_v2 = vpop.f32.mrf.mxu2 }
 0x268   : > { %v624_v3 = vmax.f32 %v1802_v1, %v1804_v2 }
 0x26a   : > { %625 = vmax.xlane.f32.xlu1 %v624_v3 }
 0x26f   : > { %v587_v4 = vpop.xlane.xlu1 %586  ;;  %v1808_v5 = vpop.f32.mrf.mxu3 }
 0x270   : > { %v633_v6 = vsub.f32 %v472_v26, %v587_v4  ;;  %v634_v7 = vsub.f32 %v537_v27, %v587_v4  ;;  %v1810_v8 = vpop.f32.mrf.mxu2 }
 0x271   : > { %v627_v9 = vmax.f32 %v1808_v5, %v1810_v8 }
 0x272   : > { %v665_v10 = vmul.f32 1.442695, %v633_v6  ;;  %v667_v11 = vmul.f32 1.442695, %v634_v7 }
 0x273   : > { %628 = vmax.xlane.f32.xlu2 %v627_v9 }
 0x274   : > { %1194 = vpow2.f32 %v665_v10 }
 0x275   : > { %1196 = vpow2.f32 %v667_v11 }
 0x277   : > { %v590_v12 = vpop.xlane.xlu1 %589  ;;  %v1814_v13 = vpop.f32.mrf.mxu3 }
 0x278   : > { %v635_v14 = vsub.f32 %v1730_v29, %v590_v12  ;;  %v636_v15 = vsub.f32 %v1732_v30, %v590_v12  ;;  %v1818_v16 = vpop.f32.mrf.mxu2 }
 0x279   : > { %v630_v17 = vmax.f32 %v1814_v13, %v1818_v16 }
 0x27a   : > { %v1822_v18 = vpop.eup %1194  ;;  %v669_v19 = vmul.f32 1.442695, %v635_v14  ;;  %v671_v20 = vmul.f32 1.442695, %v636_v15 }
 0x27b   : > { %v1824_v21 = vpop.eup %1196  ;;  %631 = vmax.xlane.f32.xlu1 %v630_v17 }
 0x27c   : > { %1198 = vpow2.f32 %v669_v19  ;;  %v729_v22 = vadd.f32 %v1824_v21, %v1822_v18 }
 0x27d   : > { %1200 = vpow2.f32 %v671_v20 }
 0x27e   : > { %730 = vadd.xlane.f32.xlu2 %v729_v22 }
 0x27f   : > { %v593_v23 = vpop.xlane.xlu2 %592 }
 0x280   : > { %v637_v24 = vsub.f32 %v1736_v32, %v593_v23  ;;  %v638_v25 = vsub.f32 %v1738_v33, %v593_v23 }
 0x282   : > { %v1830_v26 = vpop.eup %1198  ;;  %v673_v27 = vmul.f32 1.442695, %v637_v24  ;;  %v675_v28 = vmul.f32 1.442695, %v638_v25 }
 0x283   : > { %v1832_v29 = vpop.eup %1200 }
 0x284   : > { %1202 = vpow2.f32 %v673_v27  ;;  %v732_v30 = vadd.f32 %v1832_v29, %v1830_v26 }
 0x285   : > { %1204 = vpow2.f32 %v675_v28 }
 0x286   : > { %733 = vadd.xlane.f32.xlu1 %v732_v30 }
 0x287   : > { %v596_v31 = vpop.xlane.xlu2 %595 }
 0x288   : > { %v639_v34 = vsub.f32 %v1742_v35, %v596_v31  ;;  %v640_v37 = vsub.f32 %v1744_v36, %v596_v31 }
 0x28a   : > { %v1838_v32 = vpop.eup %1202  ;;  %v677_v33 = vmul.f32 1.442695, %v639_v34  ;;  %v679_v40 = vmul.f32 1.442695, %v640_v37 }
 0x28b   : > { %v1840_v43 = vpop.eup %1204 }
 0x28c   : > { %1206 = vpow2.f32 %v677_v33  ;;  %v735_v46 = vadd.f32 %v1840_v43, %v1838_v32 }
 0x28d   : > { %1208 = vpow2.f32 %v679_v40 }
 0x28e   : > { %736 = vadd.xlane.f32.xlu2 %v735_v46 }
 0x28f   : > { %v599_v49 = vpop.xlane.xlu1 %598 }
 0x290   : > { %v641_v52 = vsub.f32 %v1748_v38, %v599_v49  ;;  %v642_v55 = vsub.f32 %v1750_v39, %v599_v49 }
 0x292   : > { %v1846_v35 = vpop.eup %1206  ;;  %v681_v36 = vmul.f32 1.442695, %v641_v52  ;;  %v683_v58 = vmul.f32 1.442695, %v642_v55 }
 0x293   : > { %v1848_v61 = vpop.eup %1208 }
 0x294   : > { %1210 = vpow2.f32 %v681_v36  ;;  %v738_v0 = vadd.f32 %v1848_v61, %v1846_v35 }
 0x295   : > { %1212 = vpow2.f32 %v683_v58 }
 0x296   : > { %739 = vadd.xlane.f32.xlu1 %v738_v0 }
 0x297   : > { %v602_v3 = vpop.xlane.xlu2 %601 }
 0x298   : > { %v643_v4 = vsub.f32 %v1754_v41, %v602_v3  ;;  %v644_v6 = vsub.f32 %v1756_v42, %v602_v3 }
 0x29a   : > { %v1854_v38 = vpop.eup %1210  ;;  %v685_v39 = vmul.f32 1.442695, %v643_v4  ;;  %v687_v7 = vmul.f32 1.442695, %v644_v6 }
 0x29b   : > { %v1856_v9 = vpop.eup %1212 }
 0x29c   : > { %1214 = vpow2.f32 %v685_v39  ;;  %v741_v10 = vadd.f32 %v1856_v9, %v1854_v38 }
 0x29d   : > { %1216 = vpow2.f32 %v687_v7 }
 0x29e   : > { %742 = vadd.xlane.f32.xlu2 %v741_v10 }
 0x29f   : > { %v605_v11 = vpop.xlane.xlu1 %604 }
 0x2a0   : > { %v645_v12 = vsub.f32 %v1760_v44, %v605_v11  ;;  %v646_v14 = vsub.f32 %v1762_v45, %v605_v11 }
 0x2a2   : > { %v1862_v41 = vpop.eup %1214  ;;  %v689_v42 = vmul.f32 1.442695, %v645_v12  ;;  %v691_v15 = vmul.f32 1.442695, %v646_v14 }
 0x2a3   : > { %v1864_v17 = vpop.eup %1216 }
 0x2a4   : > { %1218 = vpow2.f32 %v689_v42  ;;  %v744_v19 = vadd.f32 %v1864_v17, %v1862_v41 }
 0x2a5   : > { %1220 = vpow2.f32 %v691_v15 }
 0x2a6   : > { %745 = vadd.xlane.f32.xlu1 %v744_v19 }
 0x2aa   : > { %v1868_v20 = vpop.eup %1218 }
 0x2ab   : > { %v1870_v22 = vpop.eup %1220 }
 0x2ac   : > { %v747_v44 = vadd.f32 %v1870_v22, %v1868_v20 }
 0x2ad   : > { %v608_v45 = vpop.xlane.xlu2 %607 }
 0x2ae   : > { %v647_v23 = vsub.f32 %v1766_v47, %v608_v45  ;;  %v648_v24 = vsub.f32 %v1768_v48, %v608_v45  ;;  %748 = vadd.xlane.f32.xlu2 %v747_v44 }
 0x2b0   : > { %v693_v25 = vmul.f32 1.442695, %v647_v23  ;;  %v695_v27 = vmul.f32 1.442695, %v648_v24 }
 0x2b2   : > { %1222 = vpow2.f32 %v693_v25 }
 0x2b3   : > { %1224 = vpow2.f32 %v695_v27 }
 0x2b5   : > { %v611_v28 = vpop.xlane.xlu1 %610 }
 0x2b6   : > { %v649_v30 = vsub.f32 %v1772_v50, %v611_v28  ;;  %v650_v31 = vsub.f32 %v1774_v51, %v611_v28 }
 0x2b8   : > { %v1878_v34 = vpop.eup %1222  ;;  %v697_v37 = vmul.f32 1.442695, %v649_v30  ;;  %v699_v33 = vmul.f32 1.442695, %v650_v31 }
 0x2b9   : > { %v1880_v40 = vpop.eup %1224 }
 0x2ba   : > { %1226 = vpow2.f32 %v697_v37  ;;  %v750_v47 = vadd.f32 %v1880_v40, %v1878_v34 }
 0x2bb   : > { %1228 = vpow2.f32 %v699_v33 }
 0x2bc   : > { %751 = vadd.xlane.f32.xlu1 %v750_v47 }
 0x2bd   : > { %v614_v48 = vpop.xlane.xlu2 %613 }
 0x2be   : > { %v651_v46 = vsub.f32 %v1778_v53, %v614_v48  ;;  %v652_v49 = vsub.f32 %v1780_v54, %v614_v48 }
 0x2c0   : > { %v1886_v50 = vpop.eup %1226  ;;  %v701_v51 = vmul.f32 1.442695, %v651_v46  ;;  %v703_v52 = vmul.f32 1.442695, %v652_v49 }
 0x2c1   : > { %v1888_v55 = vpop.eup %1228 }
 0x2c2   : > { %1230 = vpow2.f32 %v701_v51  ;;  %v753_v36 = vadd.f32 %v1888_v55, %v1886_v50 }
 0x2c3   : > { %1232 = vpow2.f32 %v703_v52 }
 0x2c4   : > { %754 = vadd.xlane.f32.xlu2 %v753_v36 }
 0x2c5   : > { %v617_v58 = vpop.xlane.xlu1 %616 }
 0x2c6   : > { %v653_v0 = vsub.f32 %v1784_v56, %v617_v58  ;;  %v654_v3 = vsub.f32 %v1786_v57, %v617_v58 }
 0x2c8   : > { %v1894_v53 = vpop.eup %1230  ;;  %v705_v54 = vmul.f32 1.442695, %v653_v0  ;;  %v707_v4 = vmul.f32 1.442695, %v654_v3 }
 0x2c9   : > { %v1896_v6 = vpop.eup %1232 }
 0x2ca   : > { %1234 = vpow2.f32 %v705_v54  ;;  %v756_v39 = vadd.f32 %v1896_v6, %v1894_v53 }
 0x2cb   : > { %1236 = vpow2.f32 %v707_v4 }
 0x2cc   : > { %757 = vadd.xlane.f32.xlu1 %v756_v39 }
 0x2cd   : > { %v620_v7 = vpop.xlane.xlu2 %619 }
 0x2ce   : > { %v655_v10 = vsub.f32 %v1790_v59, %v620_v7  ;;  %v656_v11 = vsub.f32 %v1792_v60, %v620_v7 }
 0x2d0   : > { %v1902_v56 = vpop.eup %1234  ;;  %v709_v57 = vmul.f32 1.442695, %v655_v10  ;;  %v711_v12 = vmul.f32 1.442695, %v656_v11 }
 0x2d1   : > { %v1904_v14 = vpop.eup %1236 }
 0x2d2   : > { %1238 = vpow2.f32 %v709_v57  ;;  %v759_v42 = vadd.f32 %v1904_v14, %v1902_v56 }
 0x2d3   : > { %1240 = vpow2.f32 %v711_v12 }
 0x2d4   : > { %760 = vadd.xlane.f32.xlu2 %v759_v42 }
 0x2d5   : > { %v623_v15 = vpop.xlane.xlu0 %622 }
 0x2d6   : > { %v657_v19 = vsub.f32 %v1796_v62, %v623_v15  ;;  %v658_v44 = vsub.f32 %v1798_v63, %v623_v15 }
 0x2d8   : > { %v1239_v59 = vpop.eup %1238  ;;  %v713_v45 = vmul.f32 1.442695, %v657_v19  ;;  %v715_v60 = vmul.f32 1.442695, %v658_v44 }
 0x2d9   : > { %v1241_v23 = vpop.eup %1240 }
 0x2da   : > { %1242 = vpow2.f32 %v713_v45  ;;  %v762_v24 = vadd.f32 %v1241_v23, %v1239_v59 }
 0x2db   : > { %1244 = vpow2.f32 %v715_v60 }
 0x2dc   : > { %763 = vadd.xlane.f32.xlu1 %v762_v24  ;;  %v828_v24 = vld [vmem:[#allocation2 + $0x8] sm:$0xff] }
 0x2dd   : > { %v626_v25 = vpop.xlane.xlu1 %625 }
 0x2de   : > { %v659_v27 = vsub.f32 %v1802_v1, %v626_v25  ;;  %v660_v28 = vsub.f32 %v1804_v2, %v626_v25 }
 0x2e0   : > { %v1243_v30 = vpop.eup %1242  ;;  %v717_v31 = vmul.f32 1.442695, %v659_v27  ;;  %v719_v37 = vmul.f32 1.442695, %v660_v28  ;;  %v827_v28 = vld [vmem:[#allocation2] sm:$0xff] }
 0x2e1   : > { %v1245_v33 = vpop.eup %1244 }
 0x2e2   : > { %1246 = vpow2.f32 %v717_v31  ;;  %v765_v62 = vadd.f32 %v1245_v33, %v1243_v30 }
 0x2e3   : > { %1248 = vpow2.f32 %v719_v37 }
 0x2e4   : > { %766 = vadd.xlane.f32.xlu2 %v765_v62 }
 0x2e6   : > { %v629_v63 = vpop.xlane.xlu2 %628 }
 0x2e7   : > { %v661_v47 = vsub.f32 %v1808_v5, %v629_v63  ;;  %v662_v48 = vsub.f32 %v1810_v8, %v629_v63 }
 0x2e8   : > { %v1247_v46 = vpop.eup %1246 }
 0x2e9   : > { %v1249_v49 = vpop.eup %1248  ;;  %v721_v51 = vmul.f32 1.442695, %v661_v47  ;;  %v723_v52 = vmul.f32 1.442695, %v662_v48 }
 0x2ea   : > { %v768_v1 = vadd.f32 %v1249_v49, %v1247_v46 }
 0x2eb   : > { %1250 = vpow2.f32 %v721_v51 }
 0x2ec   : > { %1252 = vpow2.f32 %v723_v52  ;;  %769 = vadd.xlane.f32.xlu1 %v768_v1 }
 0x2ee   : > { %v632_v2 = vpop.xlane.xlu1 %631 }
 0x2ef   : > { %v663_v36 = vsub.f32 %v1814_v13, %v632_v2  ;;  %v664_v58 = vsub.f32 %v1818_v16, %v632_v2 }
 0x2f1   : > { %v1251_v0 = vpop.eup %1250  ;;  %v725_v3 = vmul.f32 1.442695, %v663_v36  ;;  %v727_v54 = vmul.f32 1.442695, %v664_v58  ;;  %v731_v13 = vpop.xlane.xlu2 %730 }
 0x2f2   : > { %v1253_v4 = vpop.eup %1252 }
 0x2f3   : > { %1254 = vpow2.f32 %v725_v3  ;;  %v771_v5 = vadd.f32 %v1253_v4, %v1251_v0 }
 0x2f4   : > { %1256 = vpow2.f32 %v727_v54 }
 0x2f5   : > { %772 = vadd.xlane.f32.xlu2 %v771_v5  ;;  %1258 = vrcp.f32 %v731_v13 }
 0x2f9   : > { %v1255_v8 = vpop.eup %1254  ;;  %v734_v16 = vpop.xlane.xlu1 %733 }
 0x2fa   : > { %v1257_v39 = vpop.eup %1256  ;;  %829 = vmatpush.msrb.mxu3 %v1255_v8  ;;  %1260 = vrcp.f32 %v734_v16 }
 0x2fb   : > { %849 = vmatpush.msra.mxu0 %v1257_v39  ;;  %v774_v7 = vadd.f32 %v1257_v39, %v1255_v8 }
 0x2fc   : > { %830 = vmatpush.msrb.mxu3 %v1251_v0 }
 0x2fd   : > { %850 = vmatpush.msra.mxu0 %v1253_v4  ;;  %775 = vadd.xlane.f32.xlu1 %v774_v7 }
 0x2fe   : > { %831 = vmatpush.msrb.mxu3 %v1247_v46 }
 0x2ff   : > { %851 = vmatpush.msra.mxu0 %v1249_v49 }
 0x300   : > { %832 = vmatpush.msrb.mxu3 %v1243_v30 }
 0x301   : > { %852 = vmatpush.msra.mxu0 %v1245_v33 }
 0x302   : > { %833 = vmatpush.msrb.mxu3 %v1239_v59  ;;  %v340_v59 = vld [vmem:[%s280_s25] sm:$0xff] }
 0x303   : > { %853 = vmatpush.msra.mxu0 %v1241_v23 }
 0x304   : > { %834 = vmatpush.msrb.mxu3 %v1902_v56 }
 0x305   : > { %854 = vmatpush.msra.mxu0 %v1904_v14 }
 0x306   : > { %835 = vmatpush.msrb.mxu3 %v1894_v53 }
 0x307   : > { %855 = vmatpush.msra.mxu0 %v1896_v6 }
 0x308   : > { %836 = vmatpush.msrb.mxu3 %v1886_v50 }
 0x309   : > { %856 = vmatpush.msra.mxu0 %v1888_v55 }
 0x30a   : > { %837 = vmatpush.msrb.mxu3 %v1878_v34 }
 0x30b   : > { %857 = vmatpush.msra.mxu0 %v1880_v40 }
 0x30c   : > { %838 = vmatpush.msrb.mxu3 %v1868_v20 }
 0x30d   : > { %858 = vmatpush.msra.mxu0 %v1870_v22 }
 0x30e   : > { %839 = vmatpush.msrb.mxu3 %v1862_v41 }
 0x30f   : > { %859 = vmatpush.msra.mxu0 %v1864_v17 }
 0x310   : > { %840 = vmatpush.msrb.mxu3 %v1854_v38  ;;  %v1259_v38 = vpop.eup %1258 }
 0x311   : > { %860 = vmatpush.msra.mxu0 %v1856_v9 }
 0x312   : > { %841 = vmatpush.msrb.mxu3 %v1846_v35  ;;  %v737_v35 = vpop.xlane.xlu2 %736 }
 0x313   : > { %861 = vmatpush.msra.mxu0 %v1848_v61  ;;  %v1261_v61 = vpop.eup %1260  ;;  %1262 = vrcp.f32 %v737_v35 }
 0x314   : > { %842 = vmatpush.msrb.mxu3 %v1838_v32  ;;  %v740_v32 = vpop.xlane.xlu1 %739 }
 0x315   : > { %862 = vmatpush.msra.mxu0 %v1840_v43  ;;  %1264 = vrcp.f32 %v740_v32 }
 0x316   : > { %843 = vmatpush.msrb.mxu3 %v1830_v26 }
 0x317   : > { %863 = vmatpush.msra.mxu0 %v1832_v29 }
 0x318   : > { %844 = vmatpush.msrb.mxu3 %v1822_v18 }
 0x319   : > { %864 = vmatpush.msra.mxu0 %v1824_v21  ;;  %v1263_v9 = vpop.eup %1262 }
 0x31a   : > { %v743_v26 = vpop.xlane.xlu2 %742 }
 0x31b   : > { %v1265_v43 = vpop.eup %1264  ;;  %1266 = vrcp.f32 %v743_v26 }
 0x31c   : > { %v746_v29 = vpop.xlane.xlu1 %745 }
 0x31d   : > { %1268 = vrcp.f32 %v746_v29 }
 0x31e   : > { %793 = vxpose.xlu2.b32.start [1/16] (narrow) %v1259_v38, 8 }
 0x321   : > { %v1267_v18 = vpop.eup %1266 }
 0x322   : > { %v749_v21 = vpop.xlane.xlu2 %748 }
 0x323   : > { %v1269_v41 = vpop.eup %1268  ;;  %1270 = vrcp.f32 %v749_v21 }
 0x326   : > { %794 = vxpose.xlu2.b32.cont [2/16] (narrow) %v1261_v61, 8 }
 0x329   : > { %v1271_v20 = vpop.eup %1270 }
 0x32e   : > { %795 = vxpose.xlu2.b32.cont [3/16] (narrow) %v1263_v9, 8 }
 0x32f   : > { %v752_v17 = vpop.xlane.xlu1 %751 }
 0x330   : > { %1272 = vrcp.f32 %v752_v17 }
 0x336   : > { %796 = vxpose.xlu2.b32.cont [4/16] (narrow) %v1265_v43, 8  ;;  %v1273_v34 = vpop.eup %1272 }
 0x337   : > { %v755_v22 = vpop.xlane.xlu2 %754 }
 0x338   : > { %1274 = vrcp.f32 %v755_v22 }
 0x33e   : > { %797 = vxpose.xlu2.b32.cont [5/16] (narrow) %v1267_v18, 8  ;;  %v1275_v50 = vpop.eup %1274 }
 0x33f   : > { %v758_v40 = vpop.xlane.xlu1 %757 }
 0x340   : > { %1276 = vrcp.f32 %v758_v40 }
 0x346   : > { %798 = vxpose.xlu2.b32.cont [6/16] (narrow) %v1269_v41, 8  ;;  %v1277_v53 = vpop.eup %1276 }
 0x347   : > { %v761_v55 = vpop.xlane.xlu2 %760 }
 0x348   : > { %1278 = vrcp.f32 %v761_v55 }
 0x34e   : > { %799 = vxpose.xlu2.b32.cont [7/16] (narrow) %v1271_v20, 8  ;;  %v1279_v10 = vpop.eup %1278 }
 0x34f   : > { %v764_v6 = vpop.xlane.xlu1 %763 }
 0x350   : > { %1280 = vrcp.f32 %v764_v6 }
 0x356   : > { %800 = vxpose.xlu2.b32.cont [8/16] (narrow) %v1273_v34, 8  ;;  %v1281_v56 = vpop.eup %1280 }
 0x357   : > { %v767_v11 = vpop.xlane.xlu2 %766 }
 0x358   : > { %1282 = vrcp.f32 %v767_v11 }
 0x35e   : > { %801 = vxpose.xlu2.b32.cont [9/16] (narrow) %v1275_v50, 8  ;;  %v1283_v12 = vpop.eup %1282 }
 0x35f   : > { %v770_v57 = vpop.xlane.xlu1 %769 }
 0x360   : > { %1284 = vrcp.f32 %v770_v57 }
 0x366   : > { %802 = vxpose.xlu2.b32.cont [10/16] (narrow) %v1277_v53, 8  ;;  %v1285_v42 = vpop.eup %1284 }
 0x368   : > { %v773_v14 = vpop.xlane.xlu2 %772 }
 0x369   : > { %1286 = vrcp.f32 %v773_v14 }
 0x36e   : > { %803 = vxpose.xlu2.b32.cont [11/16] (narrow) %v1279_v10, 8 }
 0x36f   : > { %v1287_v19 = vpop.eup %1286 }
 0x370   : > { %v776_v15 = vpop.xlane.xlu1 %775 }
 0x371   : > { %1288 = vrcp.f32 %v776_v15 }
 0x376   : > { %804 = vxpose.xlu2.b32.cont [12/16] (narrow) %v1281_v56, 8 }
 0x377   : > { %v1289_v44 = vpop.eup %1288 }
 0x37e   : > { %805 = vxpose.xlu2.b32.cont [13/16] (narrow) %v1283_v12, 8 }
 0x386   : > { %806 = vxpose.xlu2.b32.cont [14/16] (narrow) %v1285_v42, 8 }
 0x38e   : > { %807 = vxpose.xlu2.b32.cont [15/16] (narrow) %v1287_v19, 8 }
 0x396   : > { %808 = vxpose.xlu2.b32.end [16/16] (narrow) %v1289_v44, 8 }
 0x3b7   : > { %v809_v45 = vpop.trf.xlu2 }
 0x3b8   : > { %v825_v60 = vperm.slane %v809_v45, 0 }
 0x3ba   : > { %v826_v23 = vmul.f32 %v825_v60, %v340_v59 }
 0x3bc   : > { %845 = vmatmul.f32.vlgmr.msrb.gmra.mxu3 %v826_v23  ;;  %865 = vmatmul.f32.vlgmr.msra.gmra.mxu0 %v826_v23 }
 0x439   : > { %v866_v25 = vpop.f32.mrf.mxu0 }
 0x43a   : > { %v870_v27 = vadd.f32 %v866_v25, %v828_v24 }
 0x43c   : > { %872 = vst [vmem:[#allocation2 + $0x8] sm:$0xff] %v870_v27 }
 0x43e   : > { %876 = sbr.rel (%p1073_p2) target bundleno = 1099 (0x44b), region = 56 }
 0x43f   : > { %v846_v30 = vpop.f32.mrf.mxu3 }
 0x440   : > { %v869_v31 = vadd.f32 %v846_v30, %v827_v28 }
 0x442   : > { %871 = vst [vmem:[#allocation2] sm:$0xff] %v869_v31 }
 0x443   : > { %v878_v33 = vld [vmem:[#allocation2 + $0x8] sm:$0xff] }
 0x444   : > { %880 = vst [vmem:[%s1687_s3 + $0x8] sm:$0xff] %v878_v33 }
 0x449   : > { %v877_v37 = vld [vmem:[#allocation2] sm:$0xff] }
 0x44a   : > { %879 = vst [vmem:[%s1687_s3] sm:$0xff] %v877_v37 }
 0x44b PF: > { %s2037_s5 = sld [smem:[#allocation14_spill]]  ;;  %s895_s18 = sshll.u32 %s1687_s3, 4  ;;  %s896_s18 = int_to_ptr.vmem [resolvable:$true] %s895_s18 }
 0x44c   : > { %s2039_s6 = sld [smem:[#allocation22_spill]]  ;;  %s882_s30 = scalar_lea.sflag [#allocation5], %s1662_s11 }
 0x451   : > { %s1080_s15 = sshll.u32 %s2037_s5, 4 }
 0x452   : > { %s893_s8 = scalar_lea.hbm %s2039_s6, %s1080_s15  ;;  %s1370_s10 = scalar_lea.hbm %s2039_s6, 32 }
 0x453   : > { %s897_s29 = sshll.u32 %s893_s8, 4  ;;  %s898_s29 = int_to_ptr.hbm [resolvable:$true] %s897_s29 }
 0x454   : > { %s1364_s14 = sshra.s32 %s898_s29, 4  ;;  %s1365_s14 = int_to_ptr.hbm [resolvable:$true] %s1364_s14 }
 0x455   : > { %s1366_s12 = scalar_lea.hbm %s1365_s14, 16  ;;  %p1371_p11 = scmp.lt.s32.totalorder %s1365_s14, %s2039_s6 }
 0x456   : > { %p1367_p4 = scmp.ne.s32.totalorder %s1365_s14, %s1366_s12  ;;  %p1372_p12 = scmp.lt.s32.totalorder %s1370_s10, %s1366_s12 }
 0x458   : > { %p1368_p6 = pnand %p1367_p4, %p1589_p8  ;;  %p1373_p13 = por %p1372_p12, %p1371_p11 }
 0x45a   : > { %p1369_p5 = pneg %p1368_p6 }
 0x45c   : > { %p1374_p1 = pnand %p1373_p13, %p1369_p5 }
 0x45e   : > { %1377 = shalt.err (!%p1374_p1)
}
 0x45f   : > { %1087 = dma.vmem_to_hbm [thread:$0]  (%p1589_p8), %s896_s18, 256, %s898_s29, %s882_s30  }
 0x460 PF: > { %s2040_s11 = sld [smem:[#allocation12_spill]]  ;;  %p1101_p3 = scmp.ge.s32.totalorder %s1476_s28, 2 }
 0x462   : > { %p1097_p10 = pnand %p1101_p3, %p1593_p9 }
 0x464   : > { %p1098_p0 = pneg %p1097_p10 }
 0x466   : > { %s909_s1 = sand.u32 1, %s2040_s11  }
 0x467   : > { %s910_s5 = scalar_lea.sflag [#allocation5], %s909_s1 }
 0x468   : > { %1431 = dma.done.wait (%p1098_p0), %s910_s5, 256  }
 0x469   : > { %1433 = vsyncadd (%p1098_p0), %s910_s5, 4294967040  ;;  %s24_s28 = sadd.s32 1, %s1476_s28   ;;  %s2042_s25 = smov %s1647_s21 }
 0x46a   : > { %p21_p7 = scmp.ge.s32.totalorder %s24_s28, 6   ;;  %s2043_s15 = sld [smem:[#allocation17_spill]] }
 0x46b   : > { %s2044_s18 = smov %s1440_s19  ;;  %s2045_s19 = smov %s1444_s20 }
 0x46c   : > { %s2046_s20 = smov %s1650_s7  ;;  %s2047_s21 = smov %s1452_s22 }
 0x46d   : > { %s2048_s22 = smov %s1456_s23  ;;  %s2049_s23 = smov %s2042_s25 }
 0x46e   : > { %s2050_s24 = smov %s1468_s26  ;;  %s2051_s25 = smov %s1472_s27 }
 0x46f   : > { %s2053_s27 = smov %s2059_s16  ;;  %23 = sbr.rel (!%p21_p7) target bundleno = 17 (0x11), region = 109 }
 0x470   : > { %s2052_s26 = smov %s2043_s15 }
 0x474   :  { %916 = vsyncpa [#allocation4], 1 }
 0x475   :  { %918 = vsyncpa [#allocation4 + $0x1], 1 }
 0x476   :  { %919 = vsyncpa [#allocation7], 1 }
 0x477   :  { %921 = vsyncpa [#allocation7 + $0x1], 1 }
 0x478   :  { %922 = vsyncpa [#allocation5], 1 }
 0x479   :  { %924 = vsyncpa [#allocation5 + $0x1], 1 }

</bundles_post_ra>
